<compile_context>
chip_gen: v5e
topology: v5e:2x2
jax: 0.10.0
libtpu: 0.0.40
codegen_flags: <defaults>
</compile_context>

<pallas_src>
import math
import functools

import jax
import jax.numpy as jnp
from jax import lax
from jax.experimental import pallas as pl
from jax.experimental.pallas import tpu as pltpu


# ----------------------------- kernel ---------------------------------------


def _layer_norm(x, gamma, beta, eps=1e-5):
    mean = jnp.mean(x, axis=-1, keepdims=True)
    var = jnp.mean((x - mean) ** 2, axis=-1, keepdims=True)
    return (x - mean) * lax.rsqrt(var + eps) * gamma + beta


def _gelu_exact(x):
    # PyTorch nn.GELU() default = exact erf formulation (kept for parity).
    # TODO(synk): switch to tanh GELU (EUP slot) only if profiling shows the
    # VALU slot binding in the MLP region.
    return 0.5 * x * (1.0 + lax.erf(x * (1.0 / math.sqrt(2.0))))


def attention_block_kernel(
    x_ref,        # (S, E)   f32   streamed per-batch block
    ln_ref,       # (4, E)   f32   rows: ln1_g, ln1_b, ln2_g, ln2_b (resident)
    wqkv_ref,     # (E, 3E)  bf16  fused [wq | wk | wv]             (resident)
    bqkv_ref,     # (1, 3E)  f32
    wo_ref,       # (E, E)   bf16
    bo_ref,       # (1, E)   f32
    w1_ref,       # (E, Hd)  bf16
    b1_ref,       # (1, Hd)  f32
    w2_ref,       # (Hd, E)  bf16
    b2_ref,       # (1, E)   f32
    out_ref,      # (S, E)   f32   streamed per-batch block
    qkvh_ref,     # VMEM scratch (3, H, S, d) f32 : head-major q/k/v staging
    ocat_ref,     # VMEM scratch (S, E) f32       : concatenated head outputs
    *, num_heads,
):
    f32 = jnp.float32
    bf16 = jnp.bfloat16

    x = x_ref[...]                       # (S, E) f32
    S, E = x.shape
    d = E // num_heads
    scale = 1.0 / math.sqrt(d)

    ln = ln_ref[...]                     # (4, E)
    g1, b1_ln = ln[0:1, :], ln[1:2, :]
    g2, b2_ln = ln[2:3, :], ln[3:4, :]

    # ----- LayerNorm 1 (f32) -----
    inp = _layer_norm(x, g1, b1_ln)

    # ----- Fused QKV projection (bf16 MXU, f32 accumulation) -----
    qkv = jnp.dot(inp.astype(bf16), wqkv_ref[...],
                  preferred_element_type=f32) + bqkv_ref[...]    # (S, 3E) f32
    q = qkv[:, :E] * scale               # fold 1/sqrt(d) into q
    k = qkv[:, E:2 * E]
    v = qkv[:, 2 * E:]

    # ----- Stage heads once into head-major layout (data movement only) -----
    for h in range(num_heads):           # static; masked sub-tile stores
        sl = slice(h * d, (h + 1) * d)
        qkvh_ref[0, h] = q[:, sl]
        qkvh_ref[1, h] = k[:, sl]
        qkvh_ref[2, h] = v[:, sl]
    qh = qkvh_ref[0]                     # (H, S, d) f32
    kh = qkvh_ref[1]
    vh = qkvh_ref[2]

    # ----- Attention: one pair of head-batched einsums -----
    # TODO(synk): for long S, tile this flash-style (online softmax, KV as an
    # "arbitrary" grid axis) so the (H, S, S) scores never materialize; this
    # binds first on v7x's 64 MiB VMEM.
    s = jnp.einsum("hqd,hkd->hqk", qh.astype(bf16), kh.astype(bf16),
                   preferred_element_type=f32)                   # (H, S, S)
    s = s - jnp.max(s, axis=-1, keepdims=True)
    p = jnp.exp(s)
    p = p / jnp.sum(p, axis=-1, keepdims=True)                   # exact divide
    o = jnp.einsum("hqk,hkd->hqd", p.astype(bf16), vh.astype(bf16),
                   preferred_element_type=f32)                   # (H, S, d)

    # Re-pack heads along lanes (data movement only), then ONE K=E out-proj.
    for h in range(num_heads):
        ocat_ref[:, h * d:(h + 1) * d] = o[h]
    o_cat = ocat_ref[...]                                        # (S, E)
    attn = jnp.dot(o_cat.astype(bf16), wo_ref[...],
                   preferred_element_type=f32) + bo_ref[...]

    x1 = x + attn                        # residual 1 (f32)

    # ----- LayerNorm 2 + MLP (f32 elementwise, bf16 matmuls) -----
    y = _layer_norm(x1, g2, b2_ln)
    h1 = jnp.dot(y.astype(bf16), w1_ref[...],
                 preferred_element_type=f32) + b1_ref[...]
    h1 = _gelu_exact(h1)
    h2 = jnp.dot(h1.astype(bf16), w2_ref[...],
                 preferred_element_type=f32) + b2_ref[...]

    out_ref[...] = (x1 + h2).astype(out_ref.dtype)   # residual 2


# ----------------------------- wrapper ---------------------------------------


def prepare_params(params):
    """One-time packing (hoisted out of the forward): fuse QKV weights/biases,
    pack the LayerNorm vectors, and cast matmul weights to bf16."""
    p = params
    bf16 = jnp.bfloat16
    f32 = jnp.float32
    return {
        "ln": jnp.concatenate([p["ln1_g"], p["ln1_b"], p["ln2_g"], p["ln2_b"]],
                              axis=0).astype(f32),                   # (4, E)
        "wqkv": jnp.concatenate([p["wq"], p["wk"], p["wv"]], axis=1).astype(bf16),
        "bqkv": jnp.concatenate([p["bq"], p["bk"], p["bv"]], axis=1).astype(f32),
        "wo": p["wo"].astype(bf16), "bo": p["bo"].astype(f32),
        "w1": p["w1"].astype(bf16), "b1": p["b1"].astype(f32),
        "w2": p["w2"].astype(bf16), "b2": p["b2"].astype(f32),
    }


def attention_block(x_bse, packed, *, num_heads):
    """x_bse: (B, S, E) float32; packed = prepare_params(raw_params)."""
    B, S, E = x_bse.shape
    d = E // num_heads

    kernel = functools.partial(attention_block_kernel, num_heads=num_heads)

    def resident(arr):   # full-array block, constant index_map -> DMA'd once
        nd = arr.ndim
        return pl.BlockSpec(arr.shape, lambda b, _n=nd: (0,) * _n)

    x_spec = pl.BlockSpec((None, S, E), lambda b: (b, 0, 0))
    out_spec = pl.BlockSpec((None, S, E), lambda b: (b, 0, 0))

    in_specs = [
        x_spec,
        resident(packed["ln"]),
        resident(packed["wqkv"]),
        resident(packed["bqkv"]),
        resident(packed["wo"]),
        resident(packed["bo"]),
        resident(packed["w1"]),
        resident(packed["b1"]),
        resident(packed["w2"]),
        resident(packed["b2"]),
    ]

    grid_spec = pltpu.PrefetchScalarGridSpec(
        num_scalar_prefetch=0,
        grid=(B,),                                     # streamed batch axis
        in_specs=in_specs,
        out_specs=out_spec,
        scratch_shapes=[
            pltpu.VMEM((3, num_heads, S, d), jnp.float32),   # head-major qkv
            pltpu.VMEM((S, E), jnp.float32),                 # head concat
        ],
    )

    out = pl.pallas_call(
        kernel,
        out_shape=jax.ShapeDtypeStruct((B, S, E), jnp.float32),
        grid_spec=grid_spec,
        compiler_params=pltpu.CompilerParams(
            dimension_semantics=("parallel",),   # v7x: shard batch over 2 TCs
            vmem_limit_bytes=48 * 1024 * 1024,   # explicit; fits v5e/v6e/v7x
        ),
    )(x_bse, packed["ln"], packed["wqkv"], packed["bqkv"],
      packed["wo"], packed["bo"], packed["w1"], packed["b1"],
      packed["w2"], packed["b2"])

    # TODO(synk): at real sizes make E (and the MLP hidden) multiples of 128
    # and present a lane-dense output slab; with E=32 every store is a masked
    # partial vst.  Also add a row-block grid axis over S for long sequences.
    return out


# ----------------------------- reference (pure JAX, f32) ----------------------


def attention_block_ref(x_bse, params, *, num_heads):
    p = params
    B, S, E = x_bse.shape
    d = E // num_heads

    def ln(x, g, b):
        m = jnp.mean(x, axis=-1, keepdims=True)
        v = jnp.mean((x - m) ** 2, axis=-1, keepdims=True)
        return (x - m) / jnp.sqrt(v + 1e-5) * g + b

    inp = ln(x_bse, p["ln1_g"][0], p["ln1_b"][0])
    q = inp @ p["wq"] + p["bq"][0]
    k = inp @ p["wk"] + p["bk"][0]
    v = inp @ p["wv"] + p["bv"][0]
    q = q.reshape(B, S, num_heads, d).transpose(0, 2, 1, 3)
    k = k.reshape(B, S, num_heads, d).transpose(0, 2, 1, 3)
    v = v.reshape(B, S, num_heads, d).transpose(0, 2, 1, 3)
    s = jnp.einsum("bhqd,bhkd->bhqk", q, k) / math.sqrt(d)
    a = jax.nn.softmax(s, axis=-1)
    o = jnp.einsum("bhqk,bhkd->bhqd", a, v).transpose(0, 2, 1, 3).reshape(B, S, E)
    o = o @ p["wo"] + p["bo"][0]
    x1 = x_bse + o
    y = ln(x1, p["ln2_g"][0], p["ln2_b"][0])
    h = jax.nn.gelu(y @ p["w1"] + p["b1"][0], approximate=False)
    h = h @ p["w2"] + p["b2"][0]
    return x1 + h


# ----------------------------- main -------------------------------------------


def init_params(key, embed_dim, hidden_dim):
    E, H = embed_dim, hidden_dim
    ks = jax.random.split(key, 10)
    n = lambda k, shape, s=0.02: (s * jax.random.normal(k, shape)).astype(jnp.float32)
    return {
        # LayerNorms (gamma=1, beta=0 as in nn.LayerNorm init), kept 2D (1, E)
        "ln1_g": jnp.ones((1, E), jnp.float32),
        "ln1_b": jnp.zeros((1, E), jnp.float32),
        "ln2_g": jnp.ones((1, E), jnp.float32),
        "ln2_b": jnp.zeros((1, E), jnp.float32),
        # in_proj (already split + transposed to (in, out) = (E, E))
        "wq": n(ks[0], (E, E)), "wk": n(ks[1], (E, E)), "wv": n(ks[2], (E, E)),
        "bq": n(ks[3], (1, E)), "bk": n(ks[4], (1, E)), "bv": n(ks[5], (1, E)),
        # out_proj
        "wo": n(ks[6], (E, E)), "bo": jnp.zeros((1, E), jnp.float32),
        # MLP
        "w1": n(ks[7], (E, H)), "b1": n(ks[8], (1, H)),
        "w2": n(ks[9], (H, E)), "b2": jnp.zeros((1, E), jnp.float32),
    }


if __name__ == "__main__":
    embed_dim, hidden_dim, num_heads = 32, 64, 4
    B, S = 2, 8

    key = jax.random.PRNGKey(0)
    k_x, k_p = jax.random.split(key)

    # PyTorch layout is (S, B, E); build it that way then move to kernel layout.
    x_sbe = jax.random.normal(k_x, (S, B, embed_dim), dtype=jnp.float32)
    x_bse = jnp.transpose(x_sbe, (1, 0, 2))     # (B, S, E) for the kernel

    params = init_params(k_p, embed_dim, hidden_dim)
    packed = prepare_params(params)             # hoisted one-time packing

    out_bse = attention_block(x_bse, packed, num_heads=num_heads)
    out_bse = jax.block_until_ready(out_bse)

    ref_bse = attention_block_ref(x_bse, params, num_heads=num_heads)
    assert out_bse.shape == (B, S, embed_dim)
    max_err = float(jnp.max(jnp.abs(out_bse - ref_bse)))
    # bf16 matmuls (f32 accumulation) -> slightly looser tolerance than pure f32.
    assert jnp.allclose(out_bse, ref_bse, atol=5e-3, rtol=5e-3), max_err

    # Back to PyTorch layout (S, B, E) if the caller wants it:
    _ = jnp.transpose(out_bse, (1, 0, 2))

    print("KERNEL_OK")
</pallas_src>

<mosaic_0001>
module attributes {stable_mosaic.version = 11 : i64} {
  func.func @attention_block_kernel(%arg0: i32, %arg1: memref<1x8x32xf32, #tpu.memory_space<vmem>>, %arg2: memref<4x32xf32, #tpu.memory_space<vmem>>, %arg3: memref<32x96xbf16, #tpu.memory_space<vmem>>, %arg4: memref<1x96xf32, #tpu.memory_space<vmem>>, %arg5: memref<32x32xbf16, #tpu.memory_space<vmem>>, %arg6: memref<1x32xf32, #tpu.memory_space<vmem>>, %arg7: memref<32x64xbf16, #tpu.memory_space<vmem>>, %arg8: memref<1x64xf32, #tpu.memory_space<vmem>>, %arg9: memref<64x32xbf16, #tpu.memory_space<vmem>>, %arg10: memref<1x32xf32, #tpu.memory_space<vmem>>, %arg11: memref<1x8x32xf32, #tpu.memory_space<vmem>>, %arg12: memref<3x4x8x8xf32, #tpu.memory_space<vmem>>, %arg13: memref<8x32xf32, #tpu.memory_space<vmem>>) attributes {dimension_semantics = [#tpu.dimension_semantics<parallel>], iteration_bounds = array<i64: 2>, scalar_prefetch = 0 : i64, scratch_operands = 2 : i64, tpu.core_type = #tpu.core_type<tc>, window_params = [{transform_indices = @transform_0, window_bounds = array<i64: 1, 8, 32>}, {pipeline_mode = #tpu.pipeline_mode<synchronous>, transform_indices = @transform_1, window_bounds = array<i64: 4, 32>}, {pipeline_mode = #tpu.pipeline_mode<synchronous>, transform_indices = @transform_2, window_bounds = array<i64: 32, 96>}, {pipeline_mode = #tpu.pipeline_mode<synchronous>, transform_indices = @transform_3, window_bounds = array<i64: 1, 96>}, {pipeline_mode = #tpu.pipeline_mode<synchronous>, transform_indices = @transform_4, window_bounds = array<i64: 32, 32>}, {pipeline_mode = #tpu.pipeline_mode<synchronous>, transform_indices = @transform_5, window_bounds = array<i64: 1, 32>}, {pipeline_mode = #tpu.pipeline_mode<synchronous>, transform_indices = @transform_6, window_bounds = array<i64: 32, 64>}, {pipeline_mode = #tpu.pipeline_mode<synchronous>, transform_indices = @transform_7, window_bounds = array<i64: 1, 64>}, {pipeline_mode = #tpu.pipeline_mode<synchronous>, transform_indices = @transform_8, window_bounds = array<i64: 64, 32>}, {pipeline_mode = #tpu.pipeline_mode<synchronous>, transform_indices = @transform_9, window_bounds = array<i64: 1, 32>}, {transform_indices = @transform_10, window_bounds = array<i64: 1, 8, 32>}]} {
    %c0 = arith.constant 0 : index
    %c0_0 = arith.constant 0 : index
    %c0_1 = arith.constant 0 : index
    %0 = vector.load %arg1[%c0, %c0_0, %c0_1] : memref<1x8x32xf32, #tpu.memory_space<vmem>>, vector<1x8x32xf32>
    %1 = vector.shape_cast %0 : vector<1x8x32xf32> to vector<8x32xf32>
    %c0_2 = arith.constant 0 : index
    %c0_3 = arith.constant 0 : index
    %2 = vector.load %arg2[%c0_2, %c0_3] : memref<4x32xf32, #tpu.memory_space<vmem>>, vector<4x32xf32>
    %3 = vector.extract_strided_slice %2 {offsets = [0, 0], sizes = [1, 32], strides = [1, 1]} : vector<4x32xf32> to vector<1x32xf32>
    %4 = vector.extract_strided_slice %2 {offsets = [1, 0], sizes = [1, 32], strides = [1, 1]} : vector<4x32xf32> to vector<1x32xf32>
    %5 = vector.extract_strided_slice %2 {offsets = [2, 0], sizes = [1, 32], strides = [1, 1]} : vector<4x32xf32> to vector<1x32xf32>
    %6 = vector.extract_strided_slice %2 {offsets = [3, 0], sizes = [1, 32], strides = [1, 1]} : vector<4x32xf32> to vector<1x32xf32>
    %cst = arith.constant dense<0.000000e+00> : vector<8xf32>
    %7 = vector.multi_reduction <add>, %1, %cst [1] : vector<8x32xf32> to vector<8xf32>
    %8 = vector.shape_cast %7 : vector<8xf32> to vector<8x1xf32>
    %cst_4 = arith.constant 3.200000e+01 : f32
    %9 = vector.broadcast %cst_4 : f32 to vector<8x1xf32>
    %10 = arith.divf %8, %9 : vector<8x1xf32>
    %11 = vector.broadcast %10 : vector<8x1xf32> to vector<8x32xf32>
    %12 = arith.subf %1, %11 : vector<8x32xf32>
    %13 = arith.mulf %12, %12 : vector<8x32xf32>
    %cst_5 = arith.constant dense<0.000000e+00> : vector<8xf32>
    %14 = vector.multi_reduction <add>, %13, %cst_5 [1] : vector<8x32xf32> to vector<8xf32>
    %15 = vector.shape_cast %14 : vector<8xf32> to vector<8x1xf32>
    %cst_6 = arith.constant 3.200000e+01 : f32
    %16 = vector.broadcast %cst_6 : f32 to vector<8x1xf32>
    %17 = arith.divf %15, %16 : vector<8x1xf32>
    %18 = vector.broadcast %10 : vector<8x1xf32> to vector<8x32xf32>
    %19 = arith.subf %1, %18 : vector<8x32xf32>
    %cst_7 = arith.constant 9.99999974E-6 : f32
    %20 = vector.broadcast %cst_7 : f32 to vector<8x1xf32>
    %21 = arith.addf %17, %20 : vector<8x1xf32>
    %22 = math.rsqrt %21 : vector<8x1xf32>
    %23 = vector.broadcast %22 : vector<8x1xf32> to vector<8x32xf32>
    %24 = arith.mulf %19, %23 : vector<8x32xf32>
    %25 = vector.broadcast %3 : vector<1x32xf32> to vector<8x32xf32>
    %26 = arith.mulf %24, %25 : vector<8x32xf32>
    %27 = vector.broadcast %4 : vector<1x32xf32> to vector<8x32xf32>
    %28 = arith.addf %26, %27 : vector<8x32xf32>
    %29 = arith.truncf %28 : vector<8x32xf32> to vector<8x32xbf16>
    %c0_8 = arith.constant 0 : index
    %c0_9 = arith.constant 0 : index
    %30 = vector.load %arg3[%c0_8, %c0_9] : memref<32x96xbf16, #tpu.memory_space<vmem>>, vector<32x96xbf16>
    %cst_10 = arith.constant dense<0.000000e+00> : vector<8x96xf32>
    %31 = tpu.matmul %29, %30, %cst_10 {dimension_numbers = #tpu.dot_dimension_numbers<[1], [0], [0], [1], [0, 0, 1, 1], [], []>} : vector<8x32xbf16>, vector<32x96xbf16>, vector<8x96xf32> -> vector<8x96xf32>
    %c0_11 = arith.constant 0 : index
    %c0_12 = arith.constant 0 : index
    %32 = vector.load %arg4[%c0_11, %c0_12] : memref<1x96xf32, #tpu.memory_space<vmem>>, vector<1x96xf32>
    %33 = vector.broadcast %32 : vector<1x96xf32> to vector<8x96xf32>
    %34 = arith.addf %31, %33 : vector<8x96xf32>
    %35 = vector.extract_strided_slice %34 {offsets = [0, 0], sizes = [8, 32], strides = [1, 1]} : vector<8x96xf32> to vector<8x32xf32>
    %cst_13 = arith.constant 0.353553385 : f32
    %36 = vector.broadcast %cst_13 : f32 to vector<8x32xf32>
    %37 = arith.mulf %35, %36 : vector<8x32xf32>
    %38 = vector.extract_strided_slice %34 {offsets = [0, 32], sizes = [8, 32], strides = [1, 1]} : vector<8x96xf32> to vector<8x32xf32>
    %39 = vector.extract_strided_slice %34 {offsets = [0, 64], sizes = [8, 32], strides = [1, 1]} : vector<8x96xf32> to vector<8x32xf32>
    %40 = vector.extract_strided_slice %37 {offsets = [0, 0], sizes = [8, 8], strides = [1, 1]} : vector<8x32xf32> to vector<8x8xf32>
    %c0_14 = arith.constant 0 : index
    %c0_15 = arith.constant 0 : index
    %c0_16 = arith.constant 0 : index
    %c0_17 = arith.constant 0 : index
    %41 = vector.load %arg12[%c0_14, %c0_15, %c0_16, %c0_17] : memref<3x4x8x8xf32, #tpu.memory_space<vmem>>, vector<1x1x8x8xf32>
    %42 = vector.shape_cast %41 : vector<1x1x8x8xf32> to vector<8x8xf32>
    %43 = vector.shape_cast %40 : vector<8x8xf32> to vector<1x1x8x8xf32>
    tpu.vector_store %arg12[%c0_14, %c0_15, %c0_16, %c0_17], %43 {strides = array<i32>} : memref<3x4x8x8xf32, #tpu.memory_space<vmem>>, vector<1x1x8x8xf32>,
    %44 = vector.extract_strided_slice %38 {offsets = [0, 0], sizes = [8, 8], strides = [1, 1]} : vector<8x32xf32> to vector<8x8xf32>
    %c1 = arith.constant 1 : index
    %c0_18 = arith.constant 0 : index
    %c0_19 = arith.constant 0 : index
    %c0_20 = arith.constant 0 : index
    %45 = vector.load %arg12[%c1, %c0_18, %c0_19, %c0_20] : memref<3x4x8x8xf32, #tpu.memory_space<vmem>>, vector<1x1x8x8xf32>
    %46 = vector.shape_cast %45 : vector<1x1x8x8xf32> to vector<8x8xf32>
    %47 = vector.shape_cast %44 : vector<8x8xf32> to vector<1x1x8x8xf32>
    tpu.vector_store %arg12[%c1, %c0_18, %c0_19, %c0_20], %47 {strides = array<i32>} : memref<3x4x8x8xf32, #tpu.memory_space<vmem>>, vector<1x1x8x8xf32>,
    %48 = vector.extract_strided_slice %39 {offsets = [0, 0], sizes = [8, 8], strides = [1, 1]} : vector<8x32xf32> to vector<8x8xf32>
    %c2 = arith.constant 2 : index
    %c0_21 = arith.constant 0 : index
    %c0_22 = arith.constant 0 : index
    %c0_23 = arith.constant 0 : index
    %49 = vector.load %arg12[%c2, %c0_21, %c0_22, %c0_23] : memref<3x4x8x8xf32, #tpu.memory_space<vmem>>, vector<1x1x8x8xf32>
    %50 = vector.shape_cast %49 : vector<1x1x8x8xf32> to vector<8x8xf32>
    %51 = vector.shape_cast %48 : vector<8x8xf32> to vector<1x1x8x8xf32>
    tpu.vector_store %arg12[%c2, %c0_21, %c0_22, %c0_23], %51 {strides = array<i32>} : memref<3x4x8x8xf32, #tpu.memory_space<vmem>>, vector<1x1x8x8xf32>,
    %52 = vector.extract_strided_slice %37 {offsets = [0, 8], sizes = [8, 8], strides = [1, 1]} : vector<8x32xf32> to vector<8x8xf32>
    %c0_24 = arith.constant 0 : index
    %c1_25 = arith.constant 1 : index
    %c0_26 = arith.constant 0 : index
    %c0_27 = arith.constant 0 : index
    %53 = vector.load %arg12[%c0_24, %c1_25, %c0_26, %c0_27] : memref<3x4x8x8xf32, #tpu.memory_space<vmem>>, vector<1x1x8x8xf32>
    %54 = vector.shape_cast %53 : vector<1x1x8x8xf32> to vector<8x8xf32>
    %55 = vector.shape_cast %52 : vector<8x8xf32> to vector<1x1x8x8xf32>
    tpu.vector_store %arg12[%c0_24, %c1_25, %c0_26, %c0_27], %55 {strides = array<i32>} : memref<3x4x8x8xf32, #tpu.memory_space<vmem>>, vector<1x1x8x8xf32>,
    %56 = vector.extract_strided_slice %38 {offsets = [0, 8], sizes = [8, 8], strides = [1, 1]} : vector<8x32xf32> to vector<8x8xf32>
    %c1_28 = arith.constant 1 : index
    %c1_29 = arith.constant 1 : index
    %c0_30 = arith.constant 0 : index
    %c0_31 = arith.constant 0 : index
    %57 = vector.load %arg12[%c1_28, %c1_29, %c0_30, %c0_31] : memref<3x4x8x8xf32, #tpu.memory_space<vmem>>, vector<1x1x8x8xf32>
    %58 = vector.shape_cast %57 : vector<1x1x8x8xf32> to vector<8x8xf32>
    %59 = vector.shape_cast %56 : vector<8x8xf32> to vector<1x1x8x8xf32>
    tpu.vector_store %arg12[%c1_28, %c1_29, %c0_30, %c0_31], %59 {strides = array<i32>} : memref<3x4x8x8xf32, #tpu.memory_space<vmem>>, vector<1x1x8x8xf32>,
    %60 = vector.extract_strided_slice %39 {offsets = [0, 8], sizes = [8, 8], strides = [1, 1]} : vector<8x32xf32> to vector<8x8xf32>
    %c2_32 = arith.constant 2 : index
    %c1_33 = arith.constant 1 : index
    %c0_34 = arith.constant 0 : index
    %c0_35 = arith.constant 0 : index
    %61 = vector.load %arg12[%c2_32, %c1_33, %c0_34, %c0_35] : memref<3x4x8x8xf32, #tpu.memory_space<vmem>>, vector<1x1x8x8xf32>
    %62 = vector.shape_cast %61 : vector<1x1x8x8xf32> to vector<8x8xf32>
    %63 = vector.shape_cast %60 : vector<8x8xf32> to vector<1x1x8x8xf32>
    tpu.vector_store %arg12[%c2_32, %c1_33, %c0_34, %c0_35], %63 {strides = array<i32>} : memref<3x4x8x8xf32, #tpu.memory_space<vmem>>, vector<1x1x8x8xf32>,
    %64 = vector.extract_strided_slice %37 {offsets = [0, 16], sizes = [8, 8], strides = [1, 1]} : vector<8x32xf32> to vector<8x8xf32>
    %c0_36 = arith.constant 0 : index
    %c2_37 = arith.constant 2 : index
    %c0_38 = arith.constant 0 : index
    %c0_39 = arith.constant 0 : index
    %65 = vector.load %arg12[%c0_36, %c2_37, %c0_38, %c0_39] : memref<3x4x8x8xf32, #tpu.memory_space<vmem>>, vector<1x1x8x8xf32>
    %66 = vector.shape_cast %65 : vector<1x1x8x8xf32> to vector<8x8xf32>
    %67 = vector.shape_cast %64 : vector<8x8xf32> to vector<1x1x8x8xf32>
    tpu.vector_store %arg12[%c0_36, %c2_37, %c0_38, %c0_39], %67 {strides = array<i32>} : memref<3x4x8x8xf32, #tpu.memory_space<vmem>>, vector<1x1x8x8xf32>,
    %68 = vector.extract_strided_slice %38 {offsets = [0, 16], sizes = [8, 8], strides = [1, 1]} : vector<8x32xf32> to vector<8x8xf32>
    %c1_40 = arith.constant 1 : index
    %c2_41 = arith.constant 2 : index
    %c0_42 = arith.constant 0 : index
    %c0_43 = arith.constant 0 : index
    %69 = vector.load %arg12[%c1_40, %c2_41, %c0_42, %c0_43] : memref<3x4x8x8xf32, #tpu.memory_space<vmem>>, vector<1x1x8x8xf32>
    %70 = vector.shape_cast %69 : vector<1x1x8x8xf32> to vector<8x8xf32>
    %71 = vector.shape_cast %68 : vector<8x8xf32> to vector<1x1x8x8xf32>
    tpu.vector_store %arg12[%c1_40, %c2_41, %c0_42, %c0_43], %71 {strides = array<i32>} : memref<3x4x8x8xf32, #tpu.memory_space<vmem>>, vector<1x1x8x8xf32>,
    %72 = vector.extract_strided_slice %39 {offsets = [0, 16], sizes = [8, 8], strides = [1, 1]} : vector<8x32xf32> to vector<8x8xf32>
    %c2_44 = arith.constant 2 : index
    %c2_45 = arith.constant 2 : index
    %c0_46 = arith.constant 0 : index
    %c0_47 = arith.constant 0 : index
    %73 = vector.load %arg12[%c2_44, %c2_45, %c0_46, %c0_47] : memref<3x4x8x8xf32, #tpu.memory_space<vmem>>, vector<1x1x8x8xf32>
    %74 = vector.shape_cast %73 : vector<1x1x8x8xf32> to vector<8x8xf32>
    %75 = vector.shape_cast %72 : vector<8x8xf32> to vector<1x1x8x8xf32>
    tpu.vector_store %arg12[%c2_44, %c2_45, %c0_46, %c0_47], %75 {strides = array<i32>} : memref<3x4x8x8xf32, #tpu.memory_space<vmem>>, vector<1x1x8x8xf32>,
    %76 = vector.extract_strided_slice %37 {offsets = [0, 24], sizes = [8, 8], strides = [1, 1]} : vector<8x32xf32> to vector<8x8xf32>
    %c0_48 = arith.constant 0 : index
    %c3 = arith.constant 3 : index
    %c0_49 = arith.constant 0 : index
    %c0_50 = arith.constant 0 : index
    %77 = vector.load %arg12[%c0_48, %c3, %c0_49, %c0_50] : memref<3x4x8x8xf32, #tpu.memory_space<vmem>>, vector<1x1x8x8xf32>
    %78 = vector.shape_cast %77 : vector<1x1x8x8xf32> to vector<8x8xf32>
    %79 = vector.shape_cast %76 : vector<8x8xf32> to vector<1x1x8x8xf32>
    tpu.vector_store %arg12[%c0_48, %c3, %c0_49, %c0_50], %79 {strides = array<i32>} : memref<3x4x8x8xf32, #tpu.memory_space<vmem>>, vector<1x1x8x8xf32>,
    %80 = vector.extract_strided_slice %38 {offsets = [0, 24], sizes = [8, 8], strides = [1, 1]} : vector<8x32xf32> to vector<8x8xf32>
    %c1_51 = arith.constant 1 : index
    %c3_52 = arith.constant 3 : index
    %c0_53 = arith.constant 0 : index
    %c0_54 = arith.constant 0 : index
    %81 = vector.load %arg12[%c1_51, %c3_52, %c0_53, %c0_54] : memref<3x4x8x8xf32, #tpu.memory_space<vmem>>, vector<1x1x8x8xf32>
    %82 = vector.shape_cast %81 : vector<1x1x8x8xf32> to vector<8x8xf32>
    %83 = vector.shape_cast %80 : vector<8x8xf32> to vector<1x1x8x8xf32>
    tpu.vector_store %arg12[%c1_51, %c3_52, %c0_53, %c0_54], %83 {strides = array<i32>} : memref<3x4x8x8xf32, #tpu.memory_space<vmem>>, vector<1x1x8x8xf32>,
    %84 = vector.extract_strided_slice %39 {offsets = [0, 24], sizes = [8, 8], strides = [1, 1]} : vector<8x32xf32> to vector<8x8xf32>
    %c2_55 = arith.constant 2 : index
    %c3_56 = arith.constant 3 : index
    %c0_57 = arith.constant 0 : index
    %c0_58 = arith.constant 0 : index
    %85 = vector.load %arg12[%c2_55, %c3_56, %c0_57, %c0_58] : memref<3x4x8x8xf32, #tpu.memory_space<vmem>>, vector<1x1x8x8xf32>
    %86 = vector.shape_cast %85 : vector<1x1x8x8xf32> to vector<8x8xf32>
    %87 = vector.shape_cast %84 : vector<8x8xf32> to vector<1x1x8x8xf32>
    tpu.vector_store %arg12[%c2_55, %c3_56, %c0_57, %c0_58], %87 {strides = array<i32>} : memref<3x4x8x8xf32, #tpu.memory_space<vmem>>, vector<1x1x8x8xf32>,
    %c0_59 = arith.constant 0 : index
    %c0_60 = arith.constant 0 : index
    %c0_61 = arith.constant 0 : index
    %c0_62 = arith.constant 0 : index
    %88 = vector.load %arg12[%c0_59, %c0_60, %c0_61, %c0_62] : memref<3x4x8x8xf32, #tpu.memory_space<vmem>>, vector<1x4x8x8xf32>
    %89 = vector.shape_cast %88 : vector<1x4x8x8xf32> to vector<4x8x8xf32>
    %c1_63 = arith.constant 1 : index
    %c0_64 = arith.constant 0 : index
    %c0_65 = arith.constant 0 : index
    %c0_66 = arith.constant 0 : index
    %90 = vector.load %arg12[%c1_63, %c0_64, %c0_65, %c0_66] : memref<3x4x8x8xf32, #tpu.memory_space<vmem>>, vector<1x4x8x8xf32>
    %91 = vector.shape_cast %90 : vector<1x4x8x8xf32> to vector<4x8x8xf32>
    %c2_67 = arith.constant 2 : index
    %c0_68 = arith.constant 0 : index
    %c0_69 = arith.constant 0 : index
    %c0_70 = arith.constant 0 : index
    %92 = vector.load %arg12[%c2_67, %c0_68, %c0_69, %c0_70] : memref<3x4x8x8xf32, #tpu.memory_space<vmem>>, vector<1x4x8x8xf32>
    %93 = vector.shape_cast %92 : vector<1x4x8x8xf32> to vector<4x8x8xf32>
    %94 = arith.truncf %89 : vector<4x8x8xf32> to vector<4x8x8xbf16>
    %95 = arith.truncf %91 : vector<4x8x8xf32> to vector<4x8x8xbf16>
    "tpu.trace_start"() <{level = 10 : i32, message = "hqd,hkd->hqk"}> : () -> ()
    %cst_71 = arith.constant dense<0.000000e+00> : vector<4x8x8xf32>
    %96 = tpu.matmul %94, %95, %cst_71 {dimension_numbers = #tpu.dot_dimension_numbers<[2], [2], [1], [1], [0, 0, 0, 1, 1, 1], [0], [0]>} : vector<4x8x8xbf16>, vector<4x8x8xbf16>, vector<4x8x8xf32> -> vector<4x8x8xf32>
    "tpu.trace_stop"() : () -> ()
    %cst_72 = arith.constant dense<0xFF800000> : vector<4x8xf32>
    %97 = vector.multi_reduction <maximumf>, %96, %cst_72 [2] : vector<4x8x8xf32> to vector<4x8xf32>
    %98 = vector.shape_cast %97 : vector<4x8xf32> to vector<4x8x1xf32>
    %99 = vector.broadcast %98 : vector<4x8x1xf32> to vector<4x8x8xf32>
    %100 = arith.subf %96, %99 : vector<4x8x8xf32>
    %101 = math.exp %100 : vector<4x8x8xf32>
    %cst_73 = arith.constant dense<0.000000e+00> : vector<4x8xf32>
    %102 = vector.multi_reduction <add>, %101, %cst_73 [2] : vector<4x8x8xf32> to vector<4x8xf32>
    %103 = vector.shape_cast %102 : vector<4x8xf32> to vector<4x8x1xf32>
    %104 = vector.broadcast %103 : vector<4x8x1xf32> to vector<4x8x8xf32>
    %105 = arith.divf %101, %104 : vector<4x8x8xf32>
    %106 = arith.truncf %105 : vector<4x8x8xf32> to vector<4x8x8xbf16>
    %107 = arith.truncf %93 : vector<4x8x8xf32> to vector<4x8x8xbf16>
    "tpu.trace_start"() <{level = 10 : i32, message = "hqk,hkd->hqd"}> : () -> ()
    %cst_74 = arith.constant dense<0.000000e+00> : vector<4x8x8xf32>
    %108 = tpu.matmul %106, %107, %cst_74 {dimension_numbers = #tpu.dot_dimension_numbers<[2], [1], [1], [2], [0, 0, 0, 1, 1, 2], [0], [0]>} : vector<4x8x8xbf16>, vector<4x8x8xbf16>, vector<4x8x8xf32> -> vector<4x8x8xf32>
    "tpu.trace_stop"() : () -> ()
    %109 = vector.extract_strided_slice %108 {offsets = [0, 0, 0], sizes = [1, 8, 8], strides = [1, 1, 1]} : vector<4x8x8xf32> to vector<1x8x8xf32>
    %110 = vector.shape_cast %109 : vector<1x8x8xf32> to vector<8x8xf32>
    %c0_75 = arith.constant 0 : index
    %c0_76 = arith.constant 0 : index
    %111 = vector.load %arg13[%c0_75, %c0_76] : memref<8x32xf32, #tpu.memory_space<vmem>>, vector<8x8xf32>
    tpu.vector_store %arg13[%c0_75, %c0_76], %110 {strides = array<i32>} : memref<8x32xf32, #tpu.memory_space<vmem>>, vector<8x8xf32>,
    %112 = vector.extract_strided_slice %108 {offsets = [1, 0, 0], sizes = [1, 8, 8], strides = [1, 1, 1]} : vector<4x8x8xf32> to vector<1x8x8xf32>
    %113 = vector.shape_cast %112 : vector<1x8x8xf32> to vector<8x8xf32>
    %c0_77 = arith.constant 0 : index
    %c8 = arith.constant 8 : index
    %114 = vector.load %arg13[%c0_77, %c8] : memref<8x32xf32, #tpu.memory_space<vmem>>, vector<8x8xf32>
    tpu.vector_store %arg13[%c0_77, %c8], %113 {strides = array<i32>} : memref<8x32xf32, #tpu.memory_space<vmem>>, vector<8x8xf32>,
    %115 = vector.extract_strided_slice %108 {offsets = [2, 0, 0], sizes = [1, 8, 8], strides = [1, 1, 1]} : vector<4x8x8xf32> to vector<1x8x8xf32>
    %116 = vector.shape_cast %115 : vector<1x8x8xf32> to vector<8x8xf32>
    %c0_78 = arith.constant 0 : index
    %c16 = arith.constant 16 : index
    %117 = vector.load %arg13[%c0_78, %c16] : memref<8x32xf32, #tpu.memory_space<vmem>>, vector<8x8xf32>
    tpu.vector_store %arg13[%c0_78, %c16], %116 {strides = array<i32>} : memref<8x32xf32, #tpu.memory_space<vmem>>, vector<8x8xf32>,
    %118 = vector.extract_strided_slice %108 {offsets = [3, 0, 0], sizes = [1, 8, 8], strides = [1, 1, 1]} : vector<4x8x8xf32> to vector<1x8x8xf32>
    %119 = vector.shape_cast %118 : vector<1x8x8xf32> to vector<8x8xf32>
    %c0_79 = arith.constant 0 : index
    %c24 = arith.constant 24 : index
    %120 = vector.load %arg13[%c0_79, %c24] : memref<8x32xf32, #tpu.memory_space<vmem>>, vector<8x8xf32>
    tpu.vector_store %arg13[%c0_79, %c24], %119 {strides = array<i32>} : memref<8x32xf32, #tpu.memory_space<vmem>>, vector<8x8xf32>,
    %c0_80 = arith.constant 0 : index
    %c0_81 = arith.constant 0 : index
    %121 = vector.load %arg13[%c0_80, %c0_81] : memref<8x32xf32, #tpu.memory_space<vmem>>, vector<8x32xf32>
    %122 = arith.truncf %121 : vector<8x32xf32> to vector<8x32xbf16>
    %c0_82 = arith.constant 0 : index
    %c0_83 = arith.constant 0 : index
    %123 = vector.load %arg5[%c0_82, %c0_83] : memref<32x32xbf16, #tpu.memory_space<vmem>>, vector<32x32xbf16>
    %cst_84 = arith.constant dense<0.000000e+00> : vector<8x32xf32>
    %124 = tpu.matmul %122, %123, %cst_84 {dimension_numbers = #tpu.dot_dimension_numbers<[1], [0], [0], [1], [0, 0, 1, 1], [], []>} : vector<8x32xbf16>, vector<32x32xbf16>, vector<8x32xf32> -> vector<8x32xf32>
    %c0_85 = arith.constant 0 : index
    %c0_86 = arith.constant 0 : index
    %125 = vector.load %arg6[%c0_85, %c0_86] : memref<1x32xf32, #tpu.memory_space<vmem>>, vector<1x32xf32>
    %126 = vector.broadcast %125 : vector<1x32xf32> to vector<8x32xf32>
    %127 = arith.addf %124, %126 : vector<8x32xf32>
    %128 = arith.addf %1, %127 : vector<8x32xf32>
    %cst_87 = arith.constant dense<0.000000e+00> : vector<8xf32>
    %129 = vector.multi_reduction <add>, %128, %cst_87 [1] : vector<8x32xf32> to vector<8xf32>
    %130 = vector.shape_cast %129 : vector<8xf32> to vector<8x1xf32>
    %cst_88 = arith.constant 3.200000e+01 : f32
    %131 = vector.broadcast %cst_88 : f32 to vector<8x1xf32>
    %132 = arith.divf %130, %131 : vector<8x1xf32>
    %133 = vector.broadcast %132 : vector<8x1xf32> to vector<8x32xf32>
    %134 = arith.subf %128, %133 : vector<8x32xf32>
    %135 = arith.mulf %134, %134 : vector<8x32xf32>
    %cst_89 = arith.constant dense<0.000000e+00> : vector<8xf32>
    %136 = vector.multi_reduction <add>, %135, %cst_89 [1] : vector<8x32xf32> to vector<8xf32>
    %137 = vector.shape_cast %136 : vector<8xf32> to vector<8x1xf32>
    %cst_90 = arith.constant 3.200000e+01 : f32
    %138 = vector.broadcast %cst_90 : f32 to vector<8x1xf32>
    %139 = arith.divf %137, %138 : vector<8x1xf32>
    %140 = vector.broadcast %132 : vector<8x1xf32> to vector<8x32xf32>
    %141 = arith.subf %128, %140 : vector<8x32xf32>
    %cst_91 = arith.constant 9.99999974E-6 : f32
    %142 = vector.broadcast %cst_91 : f32 to vector<8x1xf32>
    %143 = arith.addf %139, %142 : vector<8x1xf32>
    %144 = math.rsqrt %143 : vector<8x1xf32>
    %145 = vector.broadcast %144 : vector<8x1xf32> to vector<8x32xf32>
    %146 = arith.mulf %141, %145 : vector<8x32xf32>
    %147 = vector.broadcast %5 : vector<1x32xf32> to vector<8x32xf32>
    %148 = arith.mulf %146, %147 : vector<8x32xf32>
    %149 = vector.broadcast %6 : vector<1x32xf32> to vector<8x32xf32>
    %150 = arith.addf %148, %149 : vector<8x32xf32>
    %151 = arith.truncf %150 : vector<8x32xf32> to vector<8x32xbf16>
    %c0_92 = arith.constant 0 : index
    %c0_93 = arith.constant 0 : index
    %152 = vector.load %arg7[%c0_92, %c0_93] : memref<32x64xbf16, #tpu.memory_space<vmem>>, vector<32x64xbf16>
    %cst_94 = arith.constant dense<0.000000e+00> : vector<8x64xf32>
    %153 = tpu.matmul %151, %152, %cst_94 {dimension_numbers = #tpu.dot_dimension_numbers<[1], [0], [0], [1], [0, 0, 1, 1], [], []>} : vector<8x32xbf16>, vector<32x64xbf16>, vector<8x64xf32> -> vector<8x64xf32>
    %c0_95 = arith.constant 0 : index
    %c0_96 = arith.constant 0 : index
    %154 = vector.load %arg8[%c0_95, %c0_96] : memref<1x64xf32, #tpu.memory_space<vmem>>, vector<1x64xf32>
    %155 = vector.broadcast %154 : vector<1x64xf32> to vector<8x64xf32>
    %156 = arith.addf %153, %155 : vector<8x64xf32>
    %cst_97 = arith.constant 5.000000e-01 : f32
    %157 = vector.broadcast %cst_97 : f32 to vector<8x64xf32>
    %158 = arith.mulf %157, %156 : vector<8x64xf32>
    %cst_98 = arith.constant 0.707106769 : f32
    %159 = vector.broadcast %cst_98 : f32 to vector<8x64xf32>
    %160 = arith.mulf %156, %159 : vector<8x64xf32>
    %161 = math.erf %160 : vector<8x64xf32>
    %cst_99 = arith.constant 1.000000e+00 : f32
    %162 = vector.broadcast %cst_99 : f32 to vector<8x64xf32>
    %163 = arith.addf %162, %161 : vector<8x64xf32>
    %164 = arith.mulf %158, %163 : vector<8x64xf32>
    %165 = arith.truncf %164 : vector<8x64xf32> to vector<8x64xbf16>
    %c0_100 = arith.constant 0 : index
    %c0_101 = arith.constant 0 : index
    %166 = vector.load %arg9[%c0_100, %c0_101] : memref<64x32xbf16, #tpu.memory_space<vmem>>, vector<64x32xbf16>
    %cst_102 = arith.constant dense<0.000000e+00> : vector<8x32xf32>
    %167 = tpu.matmul %165, %166, %cst_102 {dimension_numbers = #tpu.dot_dimension_numbers<[1], [0], [0], [1], [0, 0, 1, 1], [], []>} : vector<8x64xbf16>, vector<64x32xbf16>, vector<8x32xf32> -> vector<8x32xf32>
    %c0_103 = arith.constant 0 : index
    %c0_104 = arith.constant 0 : index
    %168 = vector.load %arg10[%c0_103, %c0_104] : memref<1x32xf32, #tpu.memory_space<vmem>>, vector<1x32xf32>
    %169 = vector.broadcast %168 : vector<1x32xf32> to vector<8x32xf32>
    %170 = arith.addf %167, %169 : vector<8x32xf32>
    %171 = arith.addf %128, %170 : vector<8x32xf32>
    %c0_105 = arith.constant 0 : index
    %c0_106 = arith.constant 0 : index
    %c0_107 = arith.constant 0 : index
    %172 = vector.load %arg11[%c0_105, %c0_106, %c0_107] : memref<1x8x32xf32, #tpu.memory_space<vmem>>, vector<1x8x32xf32>
    %173 = vector.shape_cast %172 : vector<1x8x32xf32> to vector<8x32xf32>
    %174 = vector.shape_cast %171 : vector<8x32xf32> to vector<1x8x32xf32>
    tpu.vector_store %arg11[%c0_105, %c0_106, %c0_107], %174 {strides = array<i32>} : memref<1x8x32xf32, #tpu.memory_space<vmem>>, vector<1x8x32xf32>,
    return
  }
  func.func @transform_0(%arg0: i32) -> (i32, i32, i32) {
    %c0_i32 = arith.constant 0 : i32
    %c0_i32_0 = arith.constant 0 : i32
    %c0_i32_1 = arith.constant 0 : i32
    return %arg0, %c0_i32, %c0_i32_0 : i32, i32, i32
  }
  func.func @transform_1(%arg0: i32) -> (i32, i32) {
    %c0_i32 = arith.constant 0 : i32
    %c0_i32_0 = arith.constant 0 : i32
    %c0_i32_1 = arith.constant 0 : i32
    return %c0_i32, %c0_i32_0 : i32, i32
  }
  func.func @transform_2(%arg0: i32) -> (i32, i32) {
    %c0_i32 = arith.constant 0 : i32
    %c0_i32_0 = arith.constant 0 : i32
    %c0_i32_1 = arith.constant 0 : i32
    return %c0_i32, %c0_i32_0 : i32, i32
  }
  func.func @transform_3(%arg0: i32) -> (i32, i32) {
    %c0_i32 = arith.constant 0 : i32
    %c0_i32_0 = arith.constant 0 : i32
    %c0_i32_1 = arith.constant 0 : i32
    return %c0_i32, %c0_i32_0 : i32, i32
  }
  func.func @transform_4(%arg0: i32) -> (i32, i32) {
    %c0_i32 = arith.constant 0 : i32
    %c0_i32_0 = arith.constant 0 : i32
    %c0_i32_1 = arith.constant 0 : i32
    return %c0_i32, %c0_i32_0 : i32, i32
  }
  func.func @transform_5(%arg0: i32) -> (i32, i32) {
    %c0_i32 = arith.constant 0 : i32
    %c0_i32_0 = arith.constant 0 : i32
    %c0_i32_1 = arith.constant 0 : i32
    return %c0_i32, %c0_i32_0 : i32, i32
  }
  func.func @transform_6(%arg0: i32) -> (i32, i32) {
    %c0_i32 = arith.constant 0 : i32
    %c0_i32_0 = arith.constant 0 : i32
    %c0_i32_1 = arith.constant 0 : i32
    return %c0_i32, %c0_i32_0 : i32, i32
  }
  func.func @transform_7(%arg0: i32) -> (i32, i32) {
    %c0_i32 = arith.constant 0 : i32
    %c0_i32_0 = arith.constant 0 : i32
    %c0_i32_1 = arith.constant 0 : i32
    return %c0_i32, %c0_i32_0 : i32, i32
  }
  func.func @transform_8(%arg0: i32) -> (i32, i32) {
    %c0_i32 = arith.constant 0 : i32
    %c0_i32_0 = arith.constant 0 : i32
    %c0_i32_1 = arith.constant 0 : i32
    return %c0_i32, %c0_i32_0 : i32, i32
  }
  func.func @transform_9(%arg0: i32) -> (i32, i32) {
    %c0_i32 = arith.constant 0 : i32
    %c0_i32_0 = arith.constant 0 : i32
    %c0_i32_1 = arith.constant 0 : i32
    return %c0_i32, %c0_i32_0 : i32, i32
  }
  func.func @transform_10(%arg0: i32) -> (i32, i32, i32) {
    %c0_i32 = arith.constant 0 : i32
    %c0_i32_0 = arith.constant 0 : i32
    %c0_i32_1 = arith.constant 0 : i32
    return %arg0, %c0_i32, %c0_i32_0 : i32, i32, i32
  }
}

</mosaic_0001>

<bundles_post_ra>
// kernel: tpu_custom_call.1
= control target key start
LH: loop header
LB: loop body
LE: loop exit
PB: predicated region body
PF: predicated region fallthrough
CT: control target
= control target key end

     0   :  { %s1759_s0 = inlined_call_operand.vmem [shape: f32[2,8,32], index: 0, kind: input, shape index: {}]   ;;  %s1760_s1 = inlined_call_operand.hbm [shape: f32[4,32], index: 1, kind: input, shape index: {}]   ;;  %s1761_s2 = inlined_call_operand.vmem [shape: bf16[32,96], index: 2, kind: input, shape index: {}]   ;;  %s1762_s3 = inlined_call_operand.vmem [shape: f32[1,96], index: 3, kind: input, shape index: {}]   ;;  %s1763_s4 = inlined_call_operand.vmem [shape: bf16[32,32], index: 4, kind: input, shape index: {}]   ;;  %s1764_s5 = inlined_call_operand.vmem [shape: f32[1,32], index: 5, kind: input, shape index: {}]   ;;  %s1765_s6 = inlined_call_operand.hbm [shape: bf16[32,64], index: 6, kind: input, shape index: {}]   ;;  %s1766_s7 = inlined_call_operand.vmem [shape: f32[1,64], index: 7, kind: input, shape index: {}]   ;;  %s1767_s8 = inlined_call_operand.vmem [shape: bf16[64,32], index: 8, kind: input, shape index: {}]   ;;  %s1768_s9 = inlined_call_operand.vmem [shape: f32[1,32], index: 9, kind: input, shape index: {}]   ;;  %s1769_s10 = inlined_call_operand.hbm [shape: f32[2,8,32], index: 10, kind: output, shape index: {}]  }
   0x1   :  { %1770 = sst [smem:[#allocation13_spill]] %s1759_s0 }
   0x2   :  { %15 = vsyncpa [#allocation5], 0 }
   0x3   :  { %16 = vsyncpa [#allocation8], 0 }
   0x4   :  { %17 = vsyncpa [#allocation6], 0 }
   0x5   :  { %19 = vsyncpa [#allocation6 + $0x1], 0  ;;  %s1504_s13 = smov 0   ;;  %s1506_s14 = smov 0  }
   0x6   :  { %s1508_s15 = smov 0   ;;  %s1510_s16 = smov 0  }
   0x7 LB: > { %s1525_s17 = sadd.s32 4294967295, %s1428_s16   ;;  %s1116_s18 = sadd.s32 4294967294, %s1428_s16   ;;  %s1428_s16 = sphi %s1510_s16, %s1780_s16   ;;  %s1424_s15 = sphi %s1508_s15, %s1779_s15   ;;  %s1420_s14 = sphi %s1506_s14, %s1778_s14   ;;  %s1416_s13 = sphi %s1504_s13, %s1777_s13  }
   0x8   : > { %s1529_s19 = sadd.s32 1, %s1428_s16   ;;  %s247_s20 = sadd.s32 1, %s1424_s15 }
   0x9   : > { %s244_s21 = ssub.s32 %s1428_s16, %s1529_s19  ;;  %p257_p0 = scmp.ne.s32.totalorder %s1424_s15, %s1420_s14 }
   0xa   : > { %p245_p1 = scmp.eq.s32.totalorder %s244_s21, 0  ;;  %p258_p2 = scmp.eq.s32.totalorder %s1525_s17, 1 }
   0xb   : > { %p263_p3 = scmp.ne.s32.totalorder %s1420_s14, %s1416_s13  ;;  %p264_p4 = scmp.eq.s32.totalorder %s1116_s18, 1 }
   0xc   : > { %s1540_s22 = scalar_select %p245_p1, %s1424_s15, %s247_s20  }
   0xd   : > { %p1542_p5 = por %p258_p2, %p257_p0  ;;  %p1546_p6 = por %p264_p4, %p263_p3 }
   0xe   : > { %p1117_p7 = scmp.ge.s32.totalorder %s1428_s16, 1  ;;  %p271_p8 = scmp.lt.s32.totalorder %s1428_s16, 3 }
   0xf   : > { %p1214_p9 = scmp.eq.s32.totalorder %s1525_s17, 0  ;;  %s283_s28 = sshll.u32 %s1760_s1, 4  ;;  %s284_s28 = int_to_ptr.hbm [resolvable:$true] %s283_s28 }
  0x10   : > { %p1553_p10 = pnand %p1117_p7, %p271_p8  ;;  %s1430_s29 = smov [#allocation4]  }
  0x11   : > { %s285_s30 = sshll.u32 %s1430_s29, 4  ;;  %s306_s18 = sshll.u32 %s1765_s6, 4  ;;  %s286_s30 = int_to_ptr.vmem [resolvable:$true] %s285_s30  ;;  %s307_s18 = int_to_ptr.hbm [resolvable:$true] %s306_s18 }
  0x12   : > { %p1203_p11 = pneg %p1553_p10  ;;  %s1431_s20 = smov [#allocation7]  }
  0x13   : > { %s308_s21 = sshll.u32 %s1431_s20, 4  ;;  %s1432_s26 = smov 64   ;;  %s309_s21 = int_to_ptr.vmem [resolvable:$true] %s308_s21 }
  0x14   : > { %p1204_p12 = pnand %p1214_p9, %p1203_p11  ;;  %s1433_s27 = smov 4  }
  0x15   : > { %340 = sbr.rel (%p1553_p10) target bundleno = 1976 (0x7b8), region = 60 }
  0x16   : > { %1206 = dma.hbm_to_vmem [thread:$0]  (!%p1204_p12), %s284_s28, 64, %s286_s30, [#allocation5]  }
  0x17   : > { %1209 = dma.hbm_to_vmem [thread:$0]  (!%p1204_p12), %s307_s18, 256, %s309_s21, [#allocation8], %s1432_s26, %s1432_s26, %s1433_s27  }
  0x1a   : > { %1403 = dma.done.wait (%p1214_p9), [#allocation5], 64  }
  0x1b   : > { %1405 = vsyncadd (%p1214_p9), [#allocation5], 4294967232 }
  0x1c   : > { %1407 = dma.done.wait (%p1214_p9), [#allocation8], 256  }
  0x1d   : > { %1409 = vsyncadd (%p1214_p9), [#allocation8], 4294967040  ;;  %p383_p13 = scmp.lt.s32.totalorder %s1525_s17, 1  ;;  %s1774_s0 = sld [smem:[#allocation13_spill]]  ;;  %vm390_vm0 = vcmask 261120   ;;  %v1434_v2 = vmov 32.0  }
  0x1e   : > { %1274 = vrcp.f32 %v1434_v2  ;;  %v1184_v14 = vld [vmem:[%s1761_s2 + $0x8] sm:$0xff]  ;;  %v1183_v15 = vld [vmem:[%s1761_s2] sm:$0xff]  ;;  %vm462_vm5 = vcmask 64512   ;;  %s1437_s30 = smov 120   ;;  %s1438_s25 = smov 80   ;;  %vm724_vm13 = vcmask 1043456  }
  0x1f   : > { %s384_s28 = scalar_select %p383_p13, %s1525_s17, 1  ;;  %454 = vmatpush.bf16.msra.mxu0 %v1184_v14  ;;  %v1598_v24 = vld [vmem:[#allocation4] sm:$0xf]  ;;  %v1270_v33 = vld [vmem:[%s1762_s3] ss:$0 sm:$0xff] }
  0x20   : > { %v420_v26 = vperm.slane %v1598_v24, 0  ;;  %v422_v29 = vperm.slane %v1598_v24, 1  ;;  %s1440_s12 = smov 104   ;;  %s1441_s18 = smov 96  }
  0x21   : > { %s1125_s29 = sshll.u32 %s384_s28, 3  ;;  %s1435_s28 = smov 72  }
  0x22   : > { %s1442_s20 = smov 40   ;;  %s1443_s21 = smov 56  }
  0x23   : > { %s386_s11 = scalar_lea.vmem %s1774_s0, %s1125_s29  ;;  %455 = vmatpush.bf16.msra.mxu0 %v1183_v15  ;;  %s1436_s29 = smov 88  }
  0x24   : > { %v1582_v0 = vld [vmem:[%s386_s11] sm:$0xff]  ;;  %v1275_v3 = vpop.eup %1274  ;;  %s1439_s11 = smov 112   ;;  %s1444_s26 = smov 48  }
  0x25   : > { %v391_v1 = vsel %vm390_vm0, %v1582_v0, 0.0  ;;  %v395_v4 = vmul.f32 32.0, %v1275_v3  ;;  %vm399_vm1 = vweird.f32 %v1275_v3  ;;  %s1445_s27 = smov 64  }
  0x26   : > { %392 = vadd.xlane.f32.xlu0 %v391_v1 }
  0x27   : > { %v396_v5 = vsub.f32 1.0, %v395_v4 }
  0x29   : > { %v397_v6 = vmul.f32 %v1275_v3, %v396_v5 }
  0x2b   : > { %v398_v7 = vadd.f32 %v1275_v3, %v397_v6 }
  0x2d   : > { %v1586_v8 = vsel %vm399_vm1, %v1275_v3, %v398_v7 }
  0x99   : > { %v393_v9 = vpop.xlane.xlu0 %392 }
  0x9a   : > { %v401_v10 = vmul.f32 %v1586_v8, %v393_v9 }
  0x9c   : > { %v402_v11 = vsub.f32 %v1582_v0, %v401_v10 }
  0x9e   : > { %v403_v12 = vmul.f32 %v402_v11, %v402_v11 }
  0xa0   : > { %v404_v13 = vsel %vm390_vm0, %v403_v12, 0.0 }
  0xa1   : > { %405 = vadd.xlane.f32.xlu0 %v404_v13 }
 0x114   : > { %v406_v16 = vpop.xlane.xlu0 %405 }
 0x115   : > { %v407_v17 = vmul.f32 %v406_v16, %v1586_v8 }
 0x117   : > { %v408_v18 = vadd.f32 1e-05, %v407_v17 }
 0x119   : > { %1276 = vrsqrt.f32 %v408_v18  ;;  %vm415_vm3 = vweird.f32 %v408_v18 }
 0x11f   : > { %v1277_v19 = vpop.eup %1276 }
 0x120   : > { %v410_v20 = vmul.f32 %v1277_v19, %v408_v18  ;;  %vm416_vm2 = vweird.f32 %v1277_v19 }
 0x121   : > { %vm417_vm4 = vmor %vm415_vm3, %vm416_vm2 }
 0x122   : > { %v411_v21 = vmul.f32 %v1277_v19, %v410_v20 }
 0x124   : > { %v412_v22 = vmul.f32 0.5, %v411_v21 }
 0x126   : > { %v413_v23 = vsub.f32 1.5, %v412_v22 }
 0x128   : > { %v414_v25 = vmul.f32 %v1277_v19, %v413_v23 }
 0x12a   : > { %v418_v27 = vsel %vm417_vm4, %v1277_v19, %v414_v25 }
 0x12b   : > { %v419_v28 = vmul.f32 %v418_v27, %v402_v11 }
 0x12d   : > { %v421_v30 = vmul.f32 %v420_v26, %v419_v28 }
 0x12f   : > { %v423_v31 = vadd.f32 %v422_v29, %v421_v30 }
 0x131   : > { %v424_v32 = vpack.c.bf16 %v423_v31, %v423_v31 }
 0x133   : > { %1134 = vmatmul.msk.bf16.vlgmr.msra.gmra.mxu0 %vm390_vm0, %v424_v32 }
 0x1b0   : > { %v457_v34 = vpop.f32.mrf.mxu0 }
 0x1b1   : > { %v1606_v35 = vadd.f32 %v1270_v33, %v457_v34 }
 0x1b3   : > { %511 = vrot.lane.b32.xlu0 %v1606_v35, %s1435_s28  ;;  %481 = vrot.lane.b32.xlu1 %v1606_v35, %s1436_s29  ;;  %v461_v36 = vmul.f32 0.35355338, %v1606_v35  ;;  %s1446_s28 = smov 16   ;;  %s1447_s29 = smov 8  }
 0x1b5   : > { %476 = vrot.lane.b32.xlu2 %v461_v36, %s1437_s30  ;;  %463 = vst.msk [vmem:[#allocation2] sm:$0xff] %vm462_vm5, %v461_v36  ;;  %s1448_s30 = smov 24  }
 0x1b8   : > { %v459_v37 = vpop.f32.mrf.mxu0 }
 0x1bb   : > { %496 = vrot.lane.b32.xlu1 %v1606_v35, %s1438_s25 }
 0x1bc   : > { %v521_v48 = vld [vmem:[#allocation2] sm:$0xff] }
 0x1bd   : > { %491 = vrot.lane.b32.xlu2 %v461_v36, %s1439_s11  ;;  %v533_v53 = vpack.c.bf16 %v521_v48, %v521_v48 }
 0x1c3   : > { %506 = vrot.lane.b32.xlu1 %v461_v36, %s1440_s12 }
 0x1c5   : > { %465 = vrot.lane.b32.xlu2 %v1606_v35, %s1441_s18 }
 0x20f   : > { %v477_v38 = vpop.permute.xlu2 %476 }
 0x210   : > { %480 = vst.msk [vmem:[#allocation2 + $0x8] sm:$0xff] %vm462_vm5, %v477_v38 }
 0x217   : > { %v492_v39 = vpop.permute.xlu2 %491  ;;  %v522_v55 = vld [vmem:[#allocation2 + $0x8] sm:$0xff] }
 0x218   : > { %495 = vst.msk [vmem:[#allocation2 + $0x10] sm:$0xff] %vm462_vm5, %v492_v39  ;;  %v534_v59 = vpack.c.bf16 %v522_v55, %v522_v55 }
 0x21f   : > { %v466_v40 = vpop.permute.xlu2 %465  ;;  %v523_v61 = vld [vmem:[#allocation2 + $0x10] sm:$0xff] }
 0x220   : > { %469 = vst.msk [vmem:[#allocation2 + $0x20] sm:$0xff] %vm462_vm5, %v466_v40  ;;  %v535_v63 = vpack.c.bf16 %v523_v61, %v523_v61 }
 0x225   : > { %v512_v41 = vpop.permute.xlu0 %511  ;;  %v482_v42 = vpop.permute.xlu1 %481 }
 0x226   : > { %515 = vst.msk [vmem:[#allocation2 + $0x38] sm:$0xff] %vm462_vm5, %v512_v41 }
 0x227   : > { %485 = vst.msk [vmem:[#allocation2 + $0x28] sm:$0xff] %vm462_vm5, %v482_v42  ;;  %v525_v43 = vld [vmem:[#allocation2 + $0x20] sm:$0xff] }
 0x228   : > { %v537_v44 = vpack.c.bf16 %v525_v43, %v525_v43 }
 0x22a   : > { %v545_v45 = vsel %vm462_vm5, %v537_v44, 0 }
 0x22b   : > { %554 = vmatpush.bf16.xpose.msra.mxu1 %v545_v45 }
 0x22d   : > { %v497_v46 = vpop.permute.xlu1 %496  ;;  %v528_v47 = vld [vmem:[#allocation2 + $0x38] sm:$0xff] }
 0x22e   : > { %500 = vst.msk [vmem:[#allocation2 + $0x30] sm:$0xff] %vm462_vm5, %v497_v46  ;;  %v526_v49 = vld [vmem:[#allocation2 + $0x28] sm:$0xff]  ;;  %v540_v50 = vpack.c.bf16 %v528_v47, %v528_v47 }
 0x22f   : > { %v538_v51 = vpack.c.bf16 %v526_v49, %v526_v49 }
 0x230   : > { %v602_v52 = vsel %vm462_vm5, %v540_v50, 0 }
 0x231   : > { %v564_v54 = vsel %vm462_vm5, %v538_v51, 0  ;;  %611 = vmatpush.bf16.xpose.msrb.mxu0 %v602_v52 }
 0x232   : > { %573 = vmatpush.bf16.xpose.msra.mxu2 %v564_v54  ;;  %1135 = vmatmul.msk.bf16.vlgmr.msra.gmra.mxu1 %vm462_vm5, %v533_v53 }
 0x235   : > { %v507_v56 = vpop.permute.xlu1 %506  ;;  %v527_v57 = vld [vmem:[#allocation2 + $0x30] sm:$0xff] }
 0x236   : > { %510 = vst.msk [vmem:[#allocation2 + $0x18] sm:$0xff] %vm462_vm5, %v507_v56  ;;  %v539_v58 = vpack.c.bf16 %v527_v57, %v527_v57 }
 0x238   : > { %v583_v60 = vsel %vm462_vm5, %v539_v58, 0 }
 0x239   : > { %1136 = vmatmul.msk.bf16.vlgmr.msra.gmra.mxu2 %vm462_vm5, %v534_v59  ;;  %592 = vmatpush.bf16.xpose.msra.mxu3 %v583_v60 }
 0x23d   : > { %v524_v62 = vld [vmem:[#allocation2 + $0x18] sm:$0xff] }
 0x23e   : > { %v536_v1 = vpack.c.bf16 %v524_v62, %v524_v62 }
 0x240   : > { %1137 = vmatmul.msk.bf16.vlgmr.msra.gmra.mxu3 %vm462_vm5, %v535_v63  ;;  %1138 = vmatmul.msk.bf16.vlgmr.msrb.gmra.mxu0 %vm462_vm5, %v536_v1 }
 0x2af   : > { %v556_v2 = vpop.f32.mrf.mxu1 }
 0x2b0   : > { %v617_v14 = vsel %vm462_vm5, %v556_v2, -inf }
 0x2b7   : > { %v558_v3 = vpop.f32.mrf.mxu1 }
 0x2bc   : > { %v575_v4 = vpop.f32.mrf.mxu2 }
 0x2bd   : > { %v613_v5 = vpop.f32.mrf.mxu0  ;;  %v620_v6 = vsel %vm462_vm5, %v575_v4, -inf }
 0x2be   : > { %621 = vmax.xlane.f32.xlu1 %v620_v6  ;;  %v626_v7 = vsel %vm462_vm5, %v613_v5, -inf }
 0x2bf   : > { %627 = vmax.xlane.f32.xlu0 %v626_v7 }
 0x2c3   : > { %v594_v9 = vpop.f32.mrf.mxu3 }
 0x2c4   : > { %v577_v10 = vpop.f32.mrf.mxu2  ;;  %v623_v11 = vsel %vm462_vm5, %v594_v9, -inf }
 0x2c5   : > { %v615_v12 = vpop.f32.mrf.mxu0  ;;  %624 = vmax.xlane.f32.xlu2 %v623_v11 }
 0x2cb   : > { %v596_v13 = vpop.f32.mrf.mxu3 }
 0x2cd   : > { %618 = vmax.xlane.f32.xlu2 %v617_v14 }
 0x331   : > { %v622_v15 = vpop.xlane.xlu1 %621 }
 0x332   : > { %v630_v16 = vsub.f32 %v575_v4, %v622_v15  ;;  %v628_v17 = vpop.xlane.xlu0 %627 }
 0x333   : > { %v632_v18 = vsub.f32 %v613_v5, %v628_v17 }
 0x334   : > { %v635_v19 = vmul.f32 1.442695, %v630_v16 }
 0x335   : > { %v639_v20 = vmul.f32 1.442695, %v632_v18 }
 0x336   : > { %1278 = vpow2.f32 %v635_v19 }
 0x337   : > { %1280 = vpow2.f32 %v639_v20 }
 0x338   : > { %v625_v21 = vpop.xlane.xlu2 %624 }
 0x339   : > { %v631_v22 = vsub.f32 %v594_v9, %v625_v21 }
 0x33b   : > { %v637_v23 = vmul.f32 1.442695, %v631_v22 }
 0x33c   : > { %v1633_v25 = vpop.eup %1278 }
 0x33d   : > { %v1635_v26 = vpop.eup %1280  ;;  %1282 = vpow2.f32 %v637_v23  ;;  %v644_v27 = vsel %vm462_vm5, %v1633_v25, 0.0 }
 0x33e   : > { %645 = vadd.xlane.f32.xlu1 %v644_v27  ;;  %v650_v28 = vsel %vm462_vm5, %v1635_v26, 0.0 }
 0x33f   : > { %651 = vadd.xlane.f32.xlu0 %v650_v28 }
 0x340   : > { %v619_v31 = vpop.xlane.xlu2 %618 }
 0x341   : > { %v629_v32 = vsub.f32 %v556_v2, %v619_v31 }
 0x343   : > { %v1641_v29 = vpop.eup %1282  ;;  %v633_v33 = vmul.f32 1.442695, %v629_v32 }
 0x344   : > { %v647_v30 = vsel %vm462_vm5, %v1641_v29, 0.0 }
 0x345   : > { %648 = vadd.xlane.f32.xlu2 %v647_v30  ;;  %1284 = vpow2.f32 %v633_v33 }
 0x34b   : > { %v1649_v34 = vpop.eup %1284 }
 0x34c   : > { %v641_v36 = vsel %vm462_vm5, %v1649_v34, 0.0 }
 0x353   : > { %516 = vrot.lane.b32.xlu0 %v1606_v35, %s1442_s20 }
 0x357   : > { %486 = vrot.lane.b32.xlu1 %v1606_v35, %s1443_s21  ;;  %s380_s21 = sand.u32 1, %s1420_s14  }
 0x35d   : > { %501 = vrot.lane.b32.xlu2 %v1606_v35, %s1444_s26  ;;  %s1124_s26 = sshll.u32 %s380_s21, 3 }
 0x35e   : > { %s382_s12 = scalar_lea.vmem [#allocation9], %s1124_s26  ;;  %s1378_s26 = scalar_lea.hbm %s1769_s10, 16 }
 0x35f   : > { %s1032_s18 = sshll.u32 %s382_s12, 4  ;;  %s1033_s18 = int_to_ptr.vmem [resolvable:$true] %s1032_s18 }
 0x365   : > { %470 = vrot.lane.b32.xlu2 %v1606_v35, %s1445_s27  ;;  %s1180_s27 = sshll.u32 %s1525_s17, 3  ;;  %s1020_s17 = scalar_lea.sflag [#allocation6], %s380_s21 }
 0x366   : > { %s1030_s11 = scalar_lea.hbm %s1769_s10, %s1180_s27 }
 0x367   : > { %s1034_s20 = sshll.u32 %s1030_s11, 4  ;;  %s1035_s20 = int_to_ptr.hbm [resolvable:$true] %s1034_s20 }
 0x368   : > { %s1372_s0 = sshra.s32 %s1035_s20, 4  ;;  %s1373_s0 = int_to_ptr.hbm [resolvable:$true] %s1372_s0 }
 0x369   : > { %p1379_p3 = scmp.lt.s32.totalorder %s1373_s0, %s1769_s10 }
 0x381   : > { %642 = vadd.xlane.f32.xlu1 %v641_v36 }
 0x3b1   : > { %v646_v37 = vpop.xlane.xlu1 %645 }
 0x3b2   : > { %1286 = vrcp.f32 %v646_v37  ;;  %v652_v38 = vpop.xlane.xlu0 %651  ;;  %v679_v3 = vand.u32 2147483648, %v646_v37  ;;  %vm673_vm15 = vweird.f32 %v646_v37  ;;  %v677_v9 = vand.u32 2147483647, %v646_v37 }
 0x3b3   : > { %1288 = vrcp.f32 %v652_v38  ;;  %vm703_vm8 = vweird.f32 %v652_v38  ;;  %v709_v55 = vand.u32 2147483648, %v652_v38  ;;  %v707_v58 = vand.u32 2147483647, %v652_v38 }
 0x3b4   : > { %v680_v15 = vor.u32 1.1754944e-38, %v679_v3  ;;  %vm678_vm3 = vcmp.eq.f32.partialorder %v677_v9, 8.507059e+37  ;;  %v1187_v9 = vld [vmem:[#allocation7] sm:$0xff] }
 0x3b5   : > { %v710_v4 = vor.u32 1.1754944e-38, %v709_v55  ;;  %vm708_vm1 = vcmp.eq.f32.partialorder %v707_v58, 8.507059e+37 }
 0x3b8   : > { %v1653_v39 = vpop.eup %1286  ;;  %v649_v40 = vpop.xlane.xlu2 %648 }
 0x3b9   : > { %v1289_v41 = vpop.eup %1288  ;;  %1290 = vrcp.f32 %v649_v40  ;;  %v669_v42 = vmul.f32 %v1653_v39, %v646_v37  ;;  %v692_v50 = vand.u32 2147483647, %v649_v40  ;;  %v694_v51 = vand.u32 2147483648, %v649_v40 }
 0x3ba   : > { %v699_v35 = vmul.f32 %v1289_v41, %v652_v38  ;;  %vm704_vm6 = vweird.f32 %v1289_v41  ;;  %vm688_vm10 = vweird.f32 %v649_v40  ;;  %vm674_vm11 = vweird.f32 %v1653_v39 }
 0x3bb   : > { %v670_v45 = vsub.f32 1.0, %v669_v42  ;;  %vm1658_vm9 = vmor %vm703_vm8, %vm704_vm6  ;;  %v695_v60 = vor.u32 1.1754944e-38, %v694_v51  ;;  %vm693_vm14 = vcmp.eq.f32.partialorder %v692_v50, 8.507059e+37 }
 0x3bc   : > { %v700_v43 = vsub.f32 1.0, %v699_v35  ;;  %vm675_vm2 = vmor %vm673_vm15, %vm674_vm11  ;;  %vm815_vm11 = vcmask 261312  }
 0x3bd   : > { %v671_v52 = vmul.f32 %v1653_v39, %v670_v45 }
 0x3be   : > { %v701_v46 = vmul.f32 %v1289_v41, %v700_v43 }
 0x3bf   : > { %v1291_v44 = vpop.eup %1290  ;;  %v672_v61 = vadd.f32 %v1653_v39, %v671_v52 }
 0x3c0   : > { %v684_v47 = vmul.f32 %v1291_v44, %v649_v40  ;;  %v502_v48 = vpop.permute.xlu2 %501  ;;  %v702_v53 = vadd.f32 %v1289_v41, %v701_v46  ;;  %vm689_vm7 = vweird.f32 %v1291_v44 }
 0x3c1   : > { %505 = vst.msk [vmem:[#allocation2 + $0x50] sm:$0xff] %vm462_vm5, %v502_v48  ;;  %vm690_vm12 = vmor %vm688_vm10, %vm689_vm7  ;;  %v676_v14 = vsel %vm675_vm2, %v1653_v39, %v672_v61  ;;  %vm809_vm10 = vcmask 195712  }
 0x3c2   : > { %v685_v49 = vsub.f32 1.0, %v684_v47  ;;  %v706_v62 = vsel %vm1658_vm9, %v1289_v41, %v702_v53  ;;  %v681_v19 = vsel %vm678_vm3, %v680_v15, %v676_v14  ;;  %v1185_v53 = vld [vmem:[%s1763_s4] sm:$0xff]  ;;  %vm803_vm9 = vcmask 130112  }
 0x3c3   : > { %v711_v11 = vsel %vm708_vm1, %v710_v4, %v706_v62  ;;  %vm1000_vm3 = vcmask 523264  }
 0x3c4   : > { %v686_v54 = vmul.f32 %v1291_v44, %v685_v49  ;;  %v712_v17 = vmul.f32 %v1635_v26, %v711_v11 }
 0x3c5   : > { %v517_v56 = vpop.permute.xlu0 %516 }
 0x3c6   : > { %v687_v59 = vadd.f32 %v1291_v44, %v686_v54  ;;  %520 = vst.msk [vmem:[#allocation2 + $0x58] sm:$0xff] %vm462_vm5, %v517_v56  ;;  %v716_v28 = vpack.c.bf16 %v712_v17, %v712_v17 }
 0x3c8   : > { %v471_v63 = vpop.permute.xlu2 %470  ;;  %v531_v1 = vld [vmem:[#allocation2 + $0x50] sm:$0xff]  ;;  %v691_v2 = vsel %vm690_vm12, %v1291_v44, %v687_v59  ;;  %v1271_v59 = vld [vmem:[%s1764_s5] ss:$0 sm:$0xff] }
 0x3c9   : > { %v487_v5 = vpop.permute.xlu1 %486  ;;  %474 = vst.msk [vmem:[#allocation2 + $0x40] sm:$0xff] %vm462_vm5, %v471_v63  ;;  %v719_v6 = vpack.c.bf16 %v531_v1, %v531_v1  ;;  %v696_v7 = vsel %vm693_vm14, %v695_v60, %v691_v2 }
 0x3ca   : > { %490 = vst.msk [vmem:[#allocation2 + $0x48] sm:$0xff] %vm462_vm5, %v487_v5  ;;  %v697_v10 = vmul.f32 %v1641_v29, %v696_v7  ;;  %v682_v29 = vmul.f32 %v1633_v25, %v681_v19  ;;  %v1188_v7 = vld [vmem:[#allocation7 + $0x8] sm:$0xff] }
 0x3cb   : > { %v764_v12 = vsel %vm724_vm13, %v719_v6, 0 }
 0x3cc   : > { %773 = vmatpush.bf16.msrb.mxu3 %v764_v12  ;;  %v715_v13 = vpack.c.bf16 %v697_v10, %v697_v10  ;;  %v714_v26 = vpack.c.bf16 %v682_v29, %v682_v29 }
 0x3cd   : > { %v532_v16 = vld [vmem:[#allocation2 + $0x58] sm:$0xff] }
 0x3ce   : > { %v720_v18 = vpack.c.bf16 %v532_v16, %v532_v16 }
 0x3cf   : > { %1141 = vmatmul.msk.bf16.vlgmr.msrb.gmra.mxu3 %vm462_vm5, %v715_v13 }
 0x3d0   : > { %v783_v20 = vsel %vm724_vm13, %v720_v18, 0  ;;  %v529_v21 = vld [vmem:[#allocation2 + $0x40] sm:$0xff]  ;;  %v878_v18 = vperm.slane %v1598_v24, 2 }
 0x3d1   : > { %792 = vmatpush.bf16.msra.mxu0 %v783_v20  ;;  %v717_v22 = vpack.c.bf16 %v529_v21, %v529_v21  ;;  %v530_v23 = vld [vmem:[#allocation2 + $0x48] sm:$0xff]  ;;  %v880_v21 = vperm.slane %v1598_v24, 3 }
 0x3d2   : > { %v718_v27 = vpack.c.bf16 %v530_v23, %v530_v23 }
 0x3d3   : > { %v726_v30 = vsel %vm724_vm13, %v717_v22, 0 }
 0x3d4   : > { %735 = vmatpush.bf16.msrb.mxu1 %v726_v30  ;;  %v745_v31 = vsel %vm724_vm13, %v718_v27, 0  ;;  %1142 = vmatmul.msk.bf16.vlgmr.msra.gmra.mxu0 %vm462_vm5, %v716_v28  ;;  %v1272_v27 = vld [vmem:[%s1766_s7] ss:$0 sm:$0xff] }
 0x3d5   : > { %754 = vmatpush.bf16.msrb.mxu2 %v745_v31 }
 0x3d8   : > { %1140 = vmatmul.msk.bf16.vlgmr.msrb.gmra.mxu2 %vm462_vm5, %v714_v26 }
 0x3d9   : > { %912 = vmatpush.bf16.msra.mxu2 %v1188_v7 }
 0x3dd   : > { %913 = vmatpush.bf16.msra.mxu2 %v1187_v9 }
 0x3f4   : > { %v643_v32 = vpop.xlane.xlu1 %642 }
 0x3f5   : > { %1292 = vrcp.f32 %v643_v32  ;;  %v664_v38 = vand.u32 2147483648, %v643_v32  ;;  %v662_v25 = vand.u32 2147483647, %v643_v32  ;;  %vm658_vm6 = vweird.f32 %v643_v32 }
 0x3f7   : > { %v665_v41 = vor.u32 1.1754944e-38, %v664_v38  ;;  %vm663_vm8 = vcmp.eq.f32.partialorder %v662_v25, 8.507059e+37 }
 0x3fb   : > { %v1293_v33 = vpop.eup %1292 }
 0x3fc   : > { %v654_v36 = vmul.f32 %v1293_v33, %v643_v32  ;;  %vm659_vm4 = vweird.f32 %v1293_v33 }
 0x3fd   : > { %vm660_vm7 = vmor %vm658_vm6, %vm659_vm4 }
 0x3fe   : > { %v655_v37 = vsub.f32 1.0, %v654_v36 }
 0x400   : > { %v656_v39 = vmul.f32 %v1293_v33, %v655_v37 }
 0x402   : > { %v657_v40 = vadd.f32 %v1293_v33, %v656_v39  ;;  %v1191_v39 = vld [vmem:[%s1767_s8 + $0x10] sm:$0xff] }
 0x404   : > { %v661_v35 = vsel %vm660_vm7, %v1293_v33, %v657_v40  ;;  %v1192_v33 = vld [vmem:[%s1767_s8 + $0x18] sm:$0xff] }
 0x405   : > { %v666_v42 = vsel %vm663_vm8, %v665_v41, %v661_v35  ;;  %1008 = vmatpush.bf16.msra.mxu3 %v1192_v33 }
 0x406   : > { %v667_v43 = vmul.f32 %v1649_v34, %v666_v42  ;;  %v1186_v34 = vld [vmem:[%s1763_s4 + $0x8] sm:$0xff] }
 0x407   : > { %848 = vmatpush.bf16.msra.mxu1 %v1186_v34  ;;  %v1190_v42 = vld [vmem:[%s1767_s8 + $0x8] sm:$0xff] }
 0x408   : > { %v713_v44 = vpack.c.bf16 %v667_v43, %v667_v43 }
 0x409   : > { %1009 = vmatpush.bf16.msra.mxu3 %v1191_v39 }
 0x40a   : > { %1139 = vmatmul.msk.bf16.vlgmr.msrb.gmra.mxu1 %vm462_vm5, %v713_v44 }
 0x40b   : > { %849 = vmatpush.bf16.msra.mxu1 %v1185_v53 }
 0x40d   : > { %1010 = vmatpush.bf16.msra.mxu3 %v1190_v42 }
 0x451   : > { %v794_v45 = vpop.f32.mrf.mxu0 }
 0x452   : > { %v775_v46 = vpop.f32.mrf.mxu3 }
 0x453   : > { %806 = vrot.lane.b32.xlu2 %v775_v46, %s1446_s28  ;;  %v1189_v46 = vld [vmem:[%s1767_s8] sm:$0xff]  ;;  %s1374_s28 = scalar_lea.hbm %s1373_s0, 8 }
 0x454   : > { %1011 = vmatpush.bf16.msra.mxu3 %v1189_v46  ;;  %p1375_p0 = scmp.ne.s32.totalorder %s1373_s0, %s1374_s28  ;;  %p1380_p4 = scmp.lt.s32.totalorder %s1378_s26, %s1374_s28 }
 0x456   : > { %p1376_p1 = pnand %p1375_p0, %p1542_p5  ;;  %p1381_p7 = por %p1380_p4, %p1379_p3 }
 0x458   : > { %p1377_p2 = pneg %p1376_p1 }
 0x459   : > { %v796_v47 = vpop.f32.mrf.mxu0 }
 0x45a   : > { %v777_v48 = vpop.f32.mrf.mxu3  ;;  %p1382_p8 = pnand %p1381_p7, %p1377_p2 }
 0x45b   : > { %v756_v49 = vpop.f32.mrf.mxu2 }
 0x45c   : > { %800 = vrot.lane.b32.xlu0 %v756_v49, %s1447_s29 }
 0x463   : > { %v758_v50 = vpop.f32.mrf.mxu2 }
 0x464   : > { %812 = vrot.lane.b32.xlu0 %v794_v45, %s1448_s30 }
 0x487   : > { %v737_v51 = vpop.f32.mrf.mxu1 }
 0x488   : > { %798 = vst.msk [vmem:[#allocation3] sm:$0xff] %vm462_vm5, %v737_v51 }
 0x48f   : > { %v739_v52 = vpop.f32.mrf.mxu1 }
 0x4ad   : > { %v807_v55 = vpop.permute.xlu2 %806 }
 0x4ce   : > { %v801_v54 = vpop.permute.xlu0 %800 }
 0x4cf   : > { %804 = vst.msk [vmem:[#allocation3] sm:$0xff] %vm803_vm9, %v801_v54 }
 0x4d0   : > { %810 = vst.msk [vmem:[#allocation3] sm:$0xff] %vm809_vm10, %v807_v55 }
 0x4d6   : > { %v813_v56 = vpop.permute.xlu0 %812 }
 0x4d7   : > { %816 = vst.msk [vmem:[#allocation3] sm:$0xff] %vm815_vm11, %v813_v56 }
 0x4de   : > { %v817_v57 = vld [vmem:[#allocation3] sm:$0xff] }
 0x4df   : > { %v818_v58 = vpack.c.bf16 %v817_v57, %v817_v57 }
 0x4e1   : > { %1151 = vmatmul.msk.bf16.vlgmr.msra.gmra.mxu1 %vm390_vm0, %v818_v58 }
 0x55e   : > { %v851_v60 = vpop.f32.mrf.mxu1 }
 0x55f   : > { %v852_v61 = vadd.f32 %v1271_v59, %v851_v60 }
 0x561   : > { %v1696_v62 = vadd.f32 %v852_v61, %v1582_v0 }
 0x563   : > { %v856_v63 = vsel %vm390_vm0, %v1696_v62, 0.0 }
 0x564   : > { %857 = vadd.xlane.f32.xlu2 %v856_v63 }
 0x566   : > { %v853_v1 = vpop.f32.mrf.mxu1 }
 0x5d7   : > { %v858_v2 = vpop.xlane.xlu2 %857 }
 0x5d8   : > { %v859_v3 = vmul.f32 %v858_v2, %v1586_v8 }
 0x5da   : > { %v860_v4 = vsub.f32 %v1696_v62, %v859_v3 }
 0x5dc   : > { %v861_v5 = vmul.f32 %v860_v4, %v860_v4 }
 0x5de   : > { %v862_v6 = vsel %vm390_vm0, %v861_v5, 0.0 }
 0x5df   : > { %863 = vadd.xlane.f32.xlu0 %v862_v6 }
 0x652   : > { %v864_v0 = vpop.xlane.xlu0 %863 }
 0x653   : > { %v865_v10 = vmul.f32 %v864_v0, %v1586_v8 }
 0x655   : > { %v866_v11 = vadd.f32 1e-05, %v865_v10  ;;  %v1273_v10 = vld [vmem:[%s1768_s9] ss:$0 sm:$0xff] }
 0x657   : > { %1294 = vrsqrt.f32 %v866_v11  ;;  %vm873_vm12 = vweird.f32 %v866_v11 }
 0x65d   : > { %v1295_v12 = vpop.eup %1294 }
 0x65e   : > { %v868_v13 = vmul.f32 %v1295_v12, %v866_v11  ;;  %vm874_vm5 = vweird.f32 %v1295_v12 }
 0x65f   : > { %vm875_vm13 = vmor %vm873_vm12, %vm874_vm5 }
 0x660   : > { %v869_v14 = vmul.f32 %v1295_v12, %v868_v13 }
 0x662   : > { %v870_v15 = vmul.f32 0.5, %v869_v14 }
 0x664   : > { %v871_v16 = vsub.f32 1.5, %v870_v15 }
 0x666   : > { %v872_v17 = vmul.f32 %v1295_v12, %v871_v16 }
 0x668   : > { %v876_v19 = vsel %vm875_vm13, %v1295_v12, %v872_v17 }
 0x669   : > { %v877_v20 = vmul.f32 %v876_v19, %v860_v4 }
 0x66b   : > { %v879_v22 = vmul.f32 %v878_v18, %v877_v20 }
 0x66d   : > { %v881_v23 = vadd.f32 %v880_v21, %v879_v22 }
 0x66f   : > { %v882_v8 = vpack.c.bf16 %v881_v23, %v881_v23 }
 0x671   : > { %1160 = vmatmul.msk.bf16.vlgmr.msra.gmra.mxu2 %vm390_vm0, %v882_v8 }
 0x6f4   : > { %v915_v28 = vpop.f32.mrf.mxu2 }
 0x6f5   : > { %v916_v29 = vadd.f32 %v1272_v27, %v915_v28 }
 0x6f7   : > { %v920_v30 = vmul.f32 0.70710677, %v916_v29  ;;  %v919_v6 = vmul.f32 0.5, %v916_v29 }
 0x6f9   : > { %v921_v31 = vmul.f32 %v920_v30, %v920_v30 }
 0x6fb   : > { %v922_v26 = vmin.f32 %v921_v31, 16.0 }
 0x6fc   : > { %v917_v32 = vpop.f32.mrf.mxu2 }
 0x6fd   : > { %v923_v24 = vmul.f32 2.1237322e-06, %v922_v26  ;;  %v934_v36 = vmul.f32 3.8918573e-05, %v922_v26 }
 0x6ff   : > { %v924_v37 = vadd.f32 0.00028619796, %v923_v24  ;;  %v935_v38 = vadd.f32 0.001143296, %v934_v36 }
 0x701   : > { %v925_v25 = vmul.f32 %v924_v37, %v922_v26  ;;  %v936_v40 = vmul.f32 %v935_v38, %v922_v26 }
 0x703   : > { %v937_v41 = vadd.f32 0.014752088, %v936_v40  ;;  %v926_v35 = vadd.f32 0.0036580483, %v925_v25 }
 0x705   : > { %v938_v43 = vmul.f32 %v937_v41, %v922_v26  ;;  %v927_v45 = vmul.f32 %v926_v35, %v922_v26 }
 0x707   : > { %v939_v44 = vadd.f32 0.112945676, %v938_v43  ;;  %v928_v49 = vadd.f32 0.05243302, %v927_v45 }
 0x709   : > { %v940_v47 = vmul.f32 %v939_v44, %v922_v26  ;;  %v929_v52 = vmul.f32 %v928_v49, %v922_v26 }
 0x70b   : > { %v941_v48 = vadd.f32 0.4994258, %v940_v47  ;;  %v930_v34 = vadd.f32 0.18741608, %v929_v52 }
 0x70d   : > { %v942_v50 = vmul.f32 %v941_v48, %v922_v26  ;;  %v931_v54 = vmul.f32 %v930_v34, %v922_v26 }
 0x70f   : > { %v943_v51 = vadd.f32 1.0, %v942_v50  ;;  %v932_v58 = vadd.f32 1.1283791, %v931_v54 }
 0x711   : > { %1296 = vrcp.f32 %v943_v51  ;;  %v955_v57 = vand.u32 2147483648, %v943_v51  ;;  %v953_v60 = vand.u32 2147483647, %v943_v51  ;;  %vm949_vm15 = vweird.f32 %v943_v51 }
 0x712   : > { %v933_v1 = vmul.f32 %v932_v58, %v920_v30 }
 0x713   : > { %v956_v63 = vor.u32 1.1754944e-38, %v955_v57  ;;  %vm954_vm2 = vcmp.eq.f32.partialorder %v953_v60, 8.507059e+37 }
 0x717   : > { %v1297_v53 = vpop.eup %1296 }
 0x718   : > { %v945_v55 = vmul.f32 %v1297_v53, %v943_v51  ;;  %vm950_vm14 = vweird.f32 %v1297_v53 }
 0x719   : > { %vm951_vm1 = vmor %vm949_vm15, %vm950_vm14 }
 0x71a   : > { %v946_v56 = vsub.f32 1.0, %v945_v55 }
 0x71c   : > { %v947_v59 = vmul.f32 %v1297_v53, %v946_v56 }
 0x71e   : > { %v948_v61 = vadd.f32 %v1297_v53, %v947_v59 }
 0x720   : > { %v952_v2 = vsel %vm951_vm1, %v1297_v53, %v948_v61 }
 0x721   : > { %v957_v3 = vsel %vm954_vm2, %v956_v63, %v952_v2 }
 0x722   : > { %v958_v4 = vmul.f32 %v957_v3, %v933_v1 }
 0x724   : > { %v1161_v5 = vclamps-f32 %v958_v4, 1.0 }
 0x726   : > { %v961_v7 = vadd.f32 1.0, %v1161_v5 }
 0x728   : > { %v962_v9 = vmul.f32 %v961_v7, %v919_v6 }
 0x72a   : > { %v963_v0 = vpack.c.bf16 %v962_v9, %v962_v9 }
 0x72c   : > { %1178 = vmatmul.msk.bf16.vlgmr.msra.gmra.mxu3 %vm1000_vm3, %v963_v0 }
 0x7af   : > { %v1013_v11 = vpop.f32.mrf.mxu3 }
 0x7b0   : > { %v1014_v12 = vadd.f32 %v1273_v10, %v1013_v11 }
 0x7b2   : > { %v1017_v13 = vadd.f32 %v1014_v12, %v1696_v62 }
 0x7b4   : > { %1018 = vst.msk [vmem:[%s382_s12] sm:$0xff] %vm390_vm0, %v1017_v13 }
 0x7b5   : > { %1385 = shalt.err (!%p1382_p8)
}
 0x7b6   : > { %1201 = dma.vmem_to_hbm [thread:$0]  (%p1542_p5), %s1033_s18, 128, %s1035_s20, %s1020_s17  }
 0x7b7   : > { %v1015_v62 = vpop.f32.mrf.mxu3 }
 0x7b8 PF: > { %p1218_p9 = scmp.ge.s32.totalorder %s1428_s16, 2  ;;  %s1046_s21 = sand.u32 1, %s1416_s13  }
 0x7b9   : > { %s1047_s11 = scalar_lea.sflag [#allocation6], %s1046_s21 }
 0x7ba   : > { %p1211_p10 = pnand %p1218_p9, %p1546_p6 }
 0x7bc   : > { %p1212_p11 = pneg %p1211_p10 }
 0x7be   : > { %1411 = dma.done.wait (%p1212_p11), %s1047_s11, 128  }
 0x7bf   : > { %1413 = vsyncadd (%p1212_p11), %s1047_s11, 4294967168  ;;  %p22_p12 = scmp.ge.s32.totalorder %s1529_s19, 4   ;;  %s1777_s13 = smov %s1420_s14 }
 0x7c0   : > { %s1778_s14 = smov %s1424_s15  ;;  %s1779_s15 = smov %s1540_s22 }
 0x7c1   : > { %s1780_s16 = smov %s1529_s19  ;;  %24 = sbr.rel (!%p22_p12) target bundleno = 7 (0x7), region = 115 }
 0x7c6   :  { %1053 = vsyncpa [#allocation5], 1 }
 0x7c7   :  { %1055 = vsyncpa [#allocation5 + $0x1], 1 }
 0x7c8   :  { %1056 = vsyncpa [#allocation8], 1 }
 0x7c9   :  { %1057 = vsyncpa [#allocation6], 1 }
 0x7ca   :  { %1059 = vsyncpa [#allocation6 + $0x1], 1 }

</bundles_post_ra>
